<compile_context>
chip_gen: v7x
topology: tpu7x:2x2x1
jax: 0.10.0
libtpu: 0.0.40
codegen_flags: <defaults>
</compile_context>

<pallas_src>
import functools

import jax
import jax.numpy as jnp
from jax.experimental import pallas as pl


def _mult_binary_loss_kernel(lens_ref, w_ref, out_ref, tgt_ref, loss_ref, *, lamda):
    pred = out_ref[...]            # (B, M, L) f32
    targ = tgt_ref[...]            # (B, M, L) f32
    B, M, L = pred.shape

    # ---- prec_loss: sum_m mean_b (pred[:, m, 0] - target[:, m, 0])^2 -------
    p0 = pred[:, :, 0:1]           # (B, M, 1)  "in decoder" prediction
    t0 = targ[:, :, 0:1]           # (B, M, 1)  "in decoder" target
    prec = jnp.sum((p0 - t0) ** 2) / jnp.float32(B)

    # ---- bce_loss, vectorized over every decoder at once -------------------
    lens_b = lens_ref[...][:, :, None]            # (1, M, 1) int32
    w_b = w_ref[...][:, :, None]                  # (1, M, 1) f32

    col = jax.lax.broadcasted_iota(jnp.int32, (B, M, L), 2)
    dec = jax.lax.broadcasted_iota(jnp.int32, (B, M, L), 1)
    # dynamic slice [1:lens[m]] along length, decoder 0 excluded
    valid = (dec != 0) & (col >= 1) & (col < lens_b)        # (B, M, L) bool

    match = (t0 > 0.0).astype(jnp.float32)        # (B, M, 1), broadcasts over L
    p = pred * match
    t = targ * match

    # F.binary_cross_entropy (mean reduction) with PyTorch's -100 log clamp
    log_p = jnp.maximum(jnp.log(p), -100.0)
    log_1mp = jnp.maximum(jnp.log(1.0 - p), -100.0)
    elem = -(t * log_p + (1.0 - t) * log_1mp)

    # per-decoder factor  w[m] / (B * (lens[m] - 1)); denominator guarded so
    # degenerate lengths contribute 0 instead of inf/nan.
    # TODO(synk): PyTorch yields nan when lens[m] == 1 for m != 0 (mean over an
    # empty slice); this kernel returns a 0 contribution for that decoder.
    denom = jnp.maximum((lens_b - 1).astype(jnp.float32) * jnp.float32(B), 1.0)
    scale = w_b / denom                           # (1, M, 1)

    bce = jnp.sum(jnp.where(valid, elem * scale, 0.0))

    total = bce + jnp.float32(lamda) * prec
    loss_ref[...] = jnp.reshape(total, (1, 1)).astype(loss_ref.dtype)


def mult_binary_loss(output, target, lens, *, reduction="mean", lamda=1.0,
                     decoders_weights=(1, 2, 1, 1, 1, 1, 2)):
    """output, target: (B, M, L) float; lens: (M,) int (lens[m] == torch lens[m][0]).

    `reduction` is stored but unused in the PyTorch forward (mean is hard-coded
    via F.* defaults), so it is ignored here as well.
    """
    B, M, L = output.shape
    output = output.astype(jnp.float32)
    target = target.astype(jnp.float32)
    weights = jnp.asarray(decoders_weights, dtype=jnp.float32).reshape(1, M)
    lens = jnp.asarray(lens, dtype=jnp.int32).reshape(1, M)

    kernel = functools.partial(_mult_binary_loss_kernel, lamda=float(lamda))

    # Single kernel invocation, full-array blocks resident in VMEM (a few KiB
    # total) -- no grid, no transposes, no pipelining needed at this size.
    loss = pl.pallas_call(
        kernel,
        out_shape=jax.ShapeDtypeStruct((1, 1), jnp.float32),
    )(lens, weights, output, target)
    return loss[0, 0]


def _reference(output, target, lens, lamda=1.0, weights=(1, 2, 1, 1, 1, 1, 2)):
    """Pure-JAX replica of the PyTorch forward (incl. the -100 log clamp of BCE)."""
    B, M, L = output.shape
    bce_loss = 0.0
    prec_loss = 0.0
    for m in range(M):
        p0 = output[:, m, 0]
        t0 = target[:, m, 0]
        if m != 0:
            cur_len = int(lens[m])
            pb = output[:, m, 1:cur_len]
            tb = target[:, m, 1:cur_len]
            match = (t0 > 0).astype(jnp.float32)[:, None]
            p = pb * match
            t = tb * match
            lp = jnp.maximum(jnp.log(p), -100.0)
            l1p = jnp.maximum(jnp.log(1.0 - p), -100.0)
            bce_loss += weights[m] * jnp.mean(-(t * lp + (1.0 - t) * l1p))
        prec_loss += jnp.mean((p0 - t0) ** 2)
    return bce_loss + lamda * prec_loss


if __name__ == "__main__":
    key = jax.random.PRNGKey(0)
    B, M, L = 4, 7, 16        # batch=4, 7 decoders (len(decoders_weights)), max length 16
    k1, k2, k3 = jax.random.split(key, 3)

    # predictions must lie in (0, 1) for binary_cross_entropy
    output = jax.nn.sigmoid(jax.random.normal(k1, (B, M, L), dtype=jnp.float32))
    target = jax.random.uniform(k2, (B, M, L), dtype=jnp.float32)
    # make the "in decoder" target column 0/1 so the match mask hits both branches
    target = target.at[:, :, 0].set(jnp.round(jax.random.uniform(k3, (B, M))))

    # lens[m] plays the role of PyTorch lens[m][0]; lens[0] is never used
    lens = jnp.array([1, 9, 16, 5, 12, 7, 10], dtype=jnp.int32)

    loss = mult_binary_loss(output, target, lens, lamda=1.0)
    loss = jax.block_until_ready(loss)

    ref = _reference(output, target, lens, lamda=1.0)
    assert jnp.allclose(loss, ref, rtol=1e-4, atol=1e-5), (float(loss), float(ref))

    print("KERNEL_OK")
</pallas_src>

<mosaic_0001>
module attributes {stable_mosaic.version = 11 : i64} {
  func.func @_mult_binary_loss_kernel(%arg0: memref<1x7xi32, #tpu.memory_space<vmem>>, %arg1: memref<1x7xf32, #tpu.memory_space<vmem>>, %arg2: memref<4x7x16xf32, #tpu.memory_space<vmem>>, %arg3: memref<4x7x16xf32, #tpu.memory_space<vmem>>, %arg4: memref<1x1xf32, #tpu.memory_space<vmem>>) attributes {dimension_semantics = [], scalar_prefetch = 0 : i64, scratch_operands = 0 : i64, tpu.core_type = #tpu.core_type<tc>} {
    %c0 = arith.constant 0 : index
    %c0_0 = arith.constant 0 : index
    %c0_1 = arith.constant 0 : index
    %0 = vector.load %arg2[%c0, %c0_0, %c0_1] : memref<4x7x16xf32, #tpu.memory_space<vmem>>, vector<4x7x16xf32>
    %c0_2 = arith.constant 0 : index
    %c0_3 = arith.constant 0 : index
    %c0_4 = arith.constant 0 : index
    %1 = vector.load %arg3[%c0_2, %c0_3, %c0_4] : memref<4x7x16xf32, #tpu.memory_space<vmem>>, vector<4x7x16xf32>
    %2 = vector.extract_strided_slice %0 {offsets = [0, 0, 0], sizes = [4, 7, 1], strides = [1, 1, 1]} : vector<4x7x16xf32> to vector<4x7x1xf32>
    %3 = vector.extract_strided_slice %1 {offsets = [0, 0, 0], sizes = [4, 7, 1], strides = [1, 1, 1]} : vector<4x7x16xf32> to vector<4x7x1xf32>
    %4 = arith.subf %2, %3 : vector<4x7x1xf32>
    %5 = arith.mulf %4, %4 : vector<4x7x1xf32>
    %6 = vector.shape_cast %5 : vector<4x7x1xf32> to vector<1x4x7x1xf32>
    %cst = arith.constant dense<0.000000e+00> : vector<1xf32>
    %7 = vector.multi_reduction <add>, %6, %cst [1, 2, 3] : vector<1x4x7x1xf32> to vector<1xf32>
    %8 = vector.shape_cast %7 : vector<1xf32> to vector<1x1x1x1xf32>
    %9 = vector.extract %8[0, 0, 0, 0] : f32 from vector<1x1x1x1xf32>
    %cst_5 = arith.constant 4.000000e+00 : f32
    %10 = arith.divf %9, %cst_5 : f32
    %c0_6 = arith.constant 0 : index
    %c0_7 = arith.constant 0 : index
    %11 = vector.load %arg0[%c0_6, %c0_7] : memref<1x7xi32, #tpu.memory_space<vmem>>, vector<1x7xi32>
    %12 = vector.shape_cast %11 : vector<1x7xi32> to vector<1x7x1xi32>
    %c0_8 = arith.constant 0 : index
    %c0_9 = arith.constant 0 : index
    %13 = vector.load %arg1[%c0_8, %c0_9] : memref<1x7xf32, #tpu.memory_space<vmem>>, vector<1x7xf32>
    %14 = vector.shape_cast %13 : vector<1x7xf32> to vector<1x7x1xf32>
    %15 = tpu.iota {dimensions = array<i32: 2>} : vector<4x7x16xi32>
    %16 = tpu.iota {dimensions = array<i32: 1>} : vector<4x7x16xi32>
    %c0_i32 = arith.constant 0 : i32
    %17 = vector.broadcast %c0_i32 : i32 to vector<4x7x16xi32>
    %18 = arith.cmpi ne, %16, %17 : vector<4x7x16xi32>
    %c1_i32 = arith.constant 1 : i32
    %19 = vector.broadcast %c1_i32 : i32 to vector<4x7x16xi32>
    %20 = arith.cmpi sge, %15, %19 : vector<4x7x16xi32>
    %21 = arith.andi %18, %20 : vector<4x7x16xi1>
    %22 = vector.broadcast %12 : vector<1x7x1xi32> to vector<4x7x16xi32>
    %23 = arith.cmpi slt, %15, %22 : vector<4x7x16xi32>
    %24 = arith.andi %21, %23 : vector<4x7x16xi1>
    %cst_10 = arith.constant 0.000000e+00 : f32
    %25 = vector.broadcast %cst_10 : f32 to vector<4x7x1xf32>
    %26 = arith.cmpf ogt, %3, %25 : vector<4x7x1xf32>
    %27 = arith.extui %26 : vector<4x7x1xi1> to vector<4x7x1xi32>
    %28 = arith.sitofp %27 : vector<4x7x1xi32> to vector<4x7x1xf32>
    %29 = vector.broadcast %28 : vector<4x7x1xf32> to vector<4x7x16xf32>
    %30 = arith.mulf %0, %29 : vector<4x7x16xf32>
    %31 = vector.broadcast %28 : vector<4x7x1xf32> to vector<4x7x16xf32>
    %32 = arith.mulf %1, %31 : vector<4x7x16xf32>
    %33 = math.log %30 : vector<4x7x16xf32>
    %cst_11 = arith.constant -1.000000e+02 : f32
    %34 = vector.broadcast %cst_11 : f32 to vector<4x7x16xf32>
    %35 = arith.maximumf %33, %34 : vector<4x7x16xf32>
    %cst_12 = arith.constant 1.000000e+00 : f32
    %36 = vector.broadcast %cst_12 : f32 to vector<4x7x16xf32>
    %37 = arith.subf %36, %30 : vector<4x7x16xf32>
    %38 = math.log %37 : vector<4x7x16xf32>
    %cst_13 = arith.constant -1.000000e+02 : f32
    %39 = vector.broadcast %cst_13 : f32 to vector<4x7x16xf32>
    %40 = arith.maximumf %38, %39 : vector<4x7x16xf32>
    %41 = arith.mulf %32, %35 : vector<4x7x16xf32>
    %cst_14 = arith.constant 1.000000e+00 : f32
    %42 = vector.broadcast %cst_14 : f32 to vector<4x7x16xf32>
    %43 = arith.subf %42, %32 : vector<4x7x16xf32>
    %44 = arith.mulf %43, %40 : vector<4x7x16xf32>
    %45 = arith.addf %41, %44 : vector<4x7x16xf32>
    %cst_15 = arith.constant 0.000000e+00 : f32
    %46 = vector.broadcast %cst_15 : f32 to vector<4x7x16xf32>
    %47 = arith.subf %46, %45 : vector<4x7x16xf32>
    %c1_i32_16 = arith.constant 1 : i32
    %48 = vector.broadcast %c1_i32_16 : i32 to vector<1x7x1xi32>
    %49 = arith.subi %12, %48 : vector<1x7x1xi32>
    %50 = arith.sitofp %49 : vector<1x7x1xi32> to vector<1x7x1xf32>
    %cst_17 = arith.constant 4.000000e+00 : f32
    %51 = vector.broadcast %cst_17 : f32 to vector<1x7x1xf32>
    %52 = arith.mulf %50, %51 : vector<1x7x1xf32>
    %cst_18 = arith.constant 1.000000e+00 : f32
    %53 = vector.broadcast %cst_18 : f32 to vector<1x7x1xf32>
    %54 = arith.maximumf %52, %53 : vector<1x7x1xf32>
    %55 = arith.divf %14, %54 : vector<1x7x1xf32>
    %56 = vector.broadcast %55 : vector<1x7x1xf32> to vector<4x7x16xf32>
    %57 = arith.mulf %47, %56 : vector<4x7x16xf32>
    %cst_19 = arith.constant 0.000000e+00 : f32
    %58 = vector.broadcast %cst_19 : f32 to vector<4x7x16xf32>
    %59 = arith.select %24, %57, %58 : vector<4x7x16xi1>, vector<4x7x16xf32>
    %60 = vector.shape_cast %59 : vector<4x7x16xf32> to vector<1x4x7x16xf32>
    %cst_20 = arith.constant dense<0.000000e+00> : vector<1xf32>
    %61 = vector.multi_reduction <add>, %60, %cst_20 [1, 2, 3] : vector<1x4x7x16xf32> to vector<1xf32>
    %62 = vector.shape_cast %61 : vector<1xf32> to vector<1x1x1x1xf32>
    %63 = vector.extract %62[0, 0, 0, 0] : f32 from vector<1x1x1x1xf32>
    %cst_21 = arith.constant 1.000000e+00 : f32
    %64 = arith.mulf %cst_21, %10 : f32
    %65 = arith.addf %63, %64 : f32
    %66 = vector.broadcast %65 : f32 to vector<1x1xf32>
    %c0_22 = arith.constant 0 : index
    %c0_23 = arith.constant 0 : index
    %67 = vector.load %arg4[%c0_22, %c0_23] : memref<1x1xf32, #tpu.memory_space<vmem>>, vector<1x1xf32>
    tpu.vector_store %arg4[%c0_22, %c0_23], %66 {strides = array<i32>} : memref<1x1xf32, #tpu.memory_space<vmem>>, vector<1x1xf32>,
    return
  }
}

</mosaic_0001>

<bundles_post_ra>
// kernel: tpu_custom_call.1
= control target key start
LH: loop header
LB: loop body
LE: loop exit
PB: predicated region body
PF: predicated region fallthrough
CT: control target
= control target key end

     0   :  { %v279_v2 = vmov 0   ;;  %v280_v5 = vmov 0.0   ;;  %s385_s0 = inlined_call_operand.vmem [shape: s32[1,7], index: 0, kind: input, shape index: {}]   ;;  %s386_s1 = inlined_call_operand.vmem [shape: f32[1,7], index: 1, kind: input, shape index: {}]   ;;  %s387_s2 = inlined_call_operand.vmem [shape: f32[4,7,16], index: 2, kind: input, shape index: {}]   ;;  %s388_s3 = inlined_call_operand.vmem [shape: f32[4,7,16], index: 3, kind: input, shape index: {}]   ;;  %s389_s4 = inlined_call_operand.hbm [shape: f32[1,1], index: 4, kind: output, shape index: {}]  }
   0x1   :  { %v310_v0 = vld [vmem:[%s388_s3 + $0x18] sm:$0x7f]  ;;  %v315_v1 = vld [vmem:[%s388_s3] sm:$0x7f]  ;;  %236 = vset.pattern.permute.xlu1 %v279_v2  ;;  %230 = vset.pattern.permute.xlu0 %v279_v2  ;;  %v321_v3 = vld [vmem:[%s388_s3 + $0x8] sm:$0x7f] }
   0x2   :  { %vm82_vm0 = vcmp.gt.f32.partialorder %v310_v0, 0.0  ;;  %vm79_vm1 = vcmp.gt.f32.partialorder %v315_v1, 0.0  ;;  %v327_v4 = vld [vmem:[%s388_s3 + $0x10] sm:$0x7f]  ;;  %vm80_vm2 = vcmp.gt.f32.partialorder %v321_v3, 0.0 }
   0x3   :  { %v221_v6 = vsel %vm82_vm0, 1.0, %v280_v5  ;;  %v218_v7 = vsel %vm79_vm1, 1.0, %v280_v5  ;;  %v219_v8 = vsel %vm80_vm2, 1.0, %v280_v5  ;;  %vm81_vm3 = vcmp.gt.f32.partialorder %v327_v4, 0.0  ;;  %v216_v10 = vld [vmem:[%s385_s0] ss:$0 sm:$0xff] }
   0x4   :  { %108 = vperm.xlu1 %236, %v221_v6   ;;  %v231_v9 = vpack.i.bf16 %v219_v8, %v218_v7 }
   0x5   :  { %9 = vsyncpa [#allocation3], 0  ;;  %v220_v11 = vsel %vm81_vm3, 1.0, %v280_v5  ;;  %v217_v12 = vld [vmem:[%s386_s1] ss:$0 sm:$0xff]  ;;  %vm34_vm4 = vcmask 6144   ;;  %v70_v55 = vlaneseq }
   0x6   :  { %232 = vperm.xlu0 %230, %v231_v9   ;;  %v18_v13 = vld [vmem:[%s387_s2] sm:$0x7f]  ;;  %v19_v14 = vld [vmem:[%s387_s2 + $0x8] sm:$0x7f]  ;;  %v20_v19 = vld [vmem:[%s387_s2 + $0x10] sm:$0x7f] }
   0x7   :  { %v26_v15 = vsub.f32 %v18_v13, %v315_v1  ;;  %v27_v16 = vsub.f32 %v19_v14, %v321_v3  ;;  %v21_v20 = vld [vmem:[%s387_s2 + $0x18] sm:$0x7f]  ;;  %v28_v21 = vsub.f32 %v20_v19, %v327_v4  ;;  %v71_v9 = vand.u32 127, %v70_v55  ;;  %s281_s7 = smov [#allocation2]  }
   0x8   :  { %60 = vbcast.lane.b32.xlu1 %v216_v10, 256  ;;  %v29_v22 = vsub.f32 %v21_v20, %v310_v0  ;;  %vm181_vm10 = vcmask 129024   ;;  %s208_s8 = sshll.u32 %s281_s7, 4  ;;  %vm200_vm11 = vcmask 0   ;;  %s209_s8 = int_to_ptr.vmem [resolvable:$true] %s208_s8 }
   0x9   :  { %v30_v17 = vmul.f32 %v26_v15, %v26_v15  ;;  %v31_v18 = vmul.f32 %v27_v16, %v27_v16  ;;  %v32_v23 = vmul.f32 %v28_v21, %v28_v21  ;;  %vm75_vm6 = vcmp.ge.s32.totalorder %v71_v9, 1  ;;  %s255_s11 = scalar_lea.vmem %s209_s8, 16  ;;  %s259_s12 = scalar_lea.vmem %s209_s8, 32 }
   0xa   :  { %103 = vperm.xlu0 %230, %v220_v11   ;;  %v33_v27 = vmul.f32 %v29_v22, %v29_v22  ;;  %p256_p0 = scmp.ne.s32.totalorder %s209_s8, %s255_s11  ;;  %p260_p1 = scmp.lt.s32.totalorder %s209_s8, %s209_s8 }
   0xb   :  { %v35_v24 = vsel %vm34_vm4, %v30_v17, 0.0  ;;  %v36_v25 = vsel %vm34_vm4, %v31_v18, 0.0  ;;  %v38_v28 = vsel %vm34_vm4, %v32_v23, 0.0  ;;  %p261_p2 = scmp.lt.s32.totalorder %s259_s12, %s255_s11 }
   0xc   :  { %v37_v26 = vadd.f32 %v36_v25, %v35_v24  ;;  %v40_v30 = vsel %vm34_vm4, %v33_v27, 0.0 }
   0xd   :  { %p262_p3 = por %p261_p2, %p260_p1 }
   0xe   :  { %68 = vbcast.lane.b32.xlu0 %v217_v12, 256  ;;  %v39_v29 = vadd.f32 %v38_v28, %v37_v26 }
   0xf   :  { %p263_p4 = pnand %p262_p3, %p256_p0 }
  0x10   :  { %v41_v31 = vadd.f32 %v40_v30, %v39_v29 }
  0x2c   :  { %42 = vadd.xlane.f32.xlu1 %v41_v31 }
  0x83   :  { %v109_v32 = vpop.permute.xlu1 %108 }
  0x84   :  { %v114_v33 = vmul.f32 %v109_v32, %v21_v20  ;;  %v118_v51 = vmul.f32 %v109_v32, %v310_v0 }
  0x85   :  { %v233_v35 = vpop.permute.xlu0 %232 }
  0x86   :  { %237 = vlog2.f32 %v114_v33  ;;  %v134_v34 = vsub.f32 1.0, %v114_v33  ;;  %v235_v36 = vunpack.i.h.bf16 %v233_v35  ;;  %v234_v37 = vunpack.i.l.bf16 %v233_v35 }
  0x87   :  { %v353_v38 = vpop.permute.xlu1 %60  ;;  %v154_v59 = vsub.f32 1.0, %v118_v51 }
  0x88   :  { %239 = vlog2.f32 %v134_v34  ;;  %v222_v39 = vadd.s32 4294967295, %v353_v38  ;;  %v111_v40 = vmul.f32 %v234_v37, %v18_v13  ;;  %v112_v41 = vmul.f32 %v235_v36, %v19_v14 }
  0x89   :  { %v104_v43 = vpop.permute.xlu0 %103  ;;  %v115_v61 = vmul.f32 %v234_v37, %v315_v1  ;;  %v116_v5 = vmul.f32 %v235_v36, %v321_v3  ;;  %v73_v14 = vshrl.u32 %v70_v55, 7  ;;  %vm77_vm7 = vcmp.lt.s32.totalorder %v71_v9, %v353_v38 }
  0x8a   :  { %v168_v42 = vcvt.s32.f32 %v222_v39  ;;  %241 = vlog2.f32 %v111_v40  ;;  %v131_v44 = vsub.f32 1.0, %v111_v40  ;;  %v132_v45 = vsub.f32 1.0, %v112_v41 }
  0x8b   :  { %243 = vlog2.f32 %v112_v41  ;;  %v113_v47 = vmul.f32 %v104_v43, %v20_v19  ;;  %v151_v16 = vsub.f32 1.0, %v115_v61  ;;  %v117_v17 = vmul.f32 %v104_v43, %v327_v4 }
  0x8c   :  { %v169_v46 = vmul.f32 4.0, %v168_v42  ;;  %245 = vlog2.f32 %v131_v44  ;;  %v152_v20 = vsub.f32 1.0, %v116_v5  ;;  %vm74_vm5 = vcmp.ne.s32.totalorder %v73_v14, 0 }
  0x8d   :  { %247 = vlog2.f32 %v132_v45  ;;  %v133_v48 = vsub.f32 1.0, %v113_v47  ;;  %v69_v28 = vpop.permute.xlu0 %68  ;;  %v153_v31 = vsub.f32 1.0, %v117_v17  ;;  %vm76_vm8 = vmand %vm74_vm5, %vm75_vm6 }
  0x8e   :  { %v170_v49 = vmax.f32 %v169_v46, 1.0  ;;  %249 = vlog2.f32 %v113_v47  ;;  %vm361_vm9 = vmand %vm76_vm8, %vm77_vm7 }
  0x8f   :  { %251 = vlog2.f32 %v133_v48 }
  0x90   :  { %v238_v50 = vpop.eup %237  ;;  %253 = vrcp.f32 %v170_v49 }
  0x91   :  { %v126_v52 = vmul.f32 0.6931472, %v238_v50 }
  0x92   :  { %v240_v53 = vpop.eup %239 }
  0x93   :  { %v142_v54 = vmul.f32 0.6931472, %v240_v53  ;;  %v130_v57 = vmax.f32 %v126_v52, -100.0 }
  0x94   :  { %v242_v56 = vpop.eup %241 }
  0x95   :  { %v146_v58 = vmax.f32 %v142_v54, -100.0  ;;  %v244_v60 = vpop.eup %243  ;;  %v120_v62 = vmul.f32 0.6931472, %v242_v56  ;;  %v150_v11 = vmul.f32 %v130_v57, %v118_v51 }
  0x96   :  { %v246_v63 = vpop.eup %245  ;;  %v122_v6 = vmul.f32 0.6931472, %v244_v60 }
  0x97   :  { %v158_v2 = vmul.f32 %v154_v59, %v146_v58  ;;  %v248_v0 = vpop.eup %247  ;;  %v127_v7 = vmax.f32 %v120_v62, -100.0  ;;  %v136_v8 = vmul.f32 0.6931472, %v246_v63 }
  0x98   :  { %v250_v10 = vpop.eup %249  ;;  %v128_v12 = vmax.f32 %v122_v6, -100.0  ;;  %v138_v13 = vmul.f32 0.6931472, %v248_v0 }
  0x99   :  { %v143_v15 = vmax.f32 %v136_v8, -100.0  ;;  %v124_v1 = vmul.f32 0.6931472, %v250_v10  ;;  %v252_v18 = vpop.eup %251  ;;  %v162_v19 = vadd.f32 %v158_v2, %v150_v11  ;;  %v147_v3 = vmul.f32 %v127_v7, %v115_v61 }
  0x9a   :  { %v144_v21 = vmax.f32 %v138_v13, -100.0  ;;  %v140_v24 = vmul.f32 0.6931472, %v252_v18  ;;  %v254_v25 = vpop.eup %253  ;;  %v148_v26 = vmul.f32 %v128_v12, %v116_v5 }
  0x9b   :  { %v155_v22 = vmul.f32 %v151_v16, %v143_v15  ;;  %v129_v23 = vmax.f32 %v124_v1, -100.0  ;;  %v166_v32 = vsub.f32 0.0, %v162_v19  ;;  %v172_v36 = vmul.f32 %v254_v25, %v69_v28 }
  0x9c   :  { %v156_v27 = vmul.f32 %v152_v20, %v144_v21  ;;  %v145_v30 = vmax.f32 %v140_v24, -100.0 }
  0x9d   :  { %v159_v29 = vadd.f32 %v155_v22, %v147_v3  ;;  %v149_v34 = vmul.f32 %v129_v23, %v117_v17  ;;  %v176_v44 = vmul.f32 %v172_v36, %v166_v32 }
  0x9e   :  { %v160_v4 = vadd.f32 %v156_v27, %v148_v26  ;;  %v157_v35 = vmul.f32 %v153_v31, %v145_v30 }
  0x9f   :  { %v163_v33 = vsub.f32 0.0, %v159_v29  ;;  %v180_v51 = vsel %vm361_vm9, %v176_v44, 0.0 }
  0xa0   :  { %v164_v37 = vsub.f32 0.0, %v160_v4  ;;  %v161_v39 = vadd.f32 %v157_v35, %v149_v34  ;;  %v187_v54 = vsel %vm181_vm10, %v180_v51, 0.0 }
  0xa1   :  { %v173_v40 = vmul.f32 %v172_v36, %v163_v33 }
  0xa2   :  { %v174_v42 = vmul.f32 %v172_v36, %v164_v37  ;;  %v165_v43 = vsub.f32 0.0, %v161_v39 }
  0xa3   :  { %v177_v45 = vsel %vm361_vm9, %v173_v40, 0.0 }
  0xa4   :  { %v178_v38 = vsel %vm361_vm9, %v174_v42, 0.0  ;;  %v182_v46 = vsel %vm181_vm10, %v177_v45, 0.0  ;;  %v175_v47 = vmul.f32 %v172_v36, %v165_v43 }
  0xa5   :  { %v183_v48 = vsel %vm181_vm10, %v178_v38, 0.0 }
  0xa6   :  { %v184_v49 = vadd.f32 %v183_v48, %v182_v46  ;;  %v179_v50 = vsel %vm361_vm9, %v175_v47, 0.0 }
  0xa7   :  { %v185_v52 = vsel %vm181_vm10, %v179_v50, 0.0 }
  0xa8   :  { %v186_v53 = vadd.f32 %v185_v52, %v184_v49 }
  0xaa   :  { %v188_v55 = vadd.f32 %v187_v54, %v186_v53 }
  0xac   :  { %189 = vadd.xlane.f32.xlu0 %v188_v55 }
  0xb9   :  { %v43_v56 = vpop.xlane.xlu1 %42 }
  0xba   :  { %v44_v57 = vrot.slane %v43_v56, 4 }
  0xbc   :  { %v45_v58 = vadd.f32 %v44_v57, %v43_v56 }
  0xbe   :  { %v46_v59 = vrot.slane %v45_v58, 2 }
  0xc0   :  { %v47_v60 = vadd.f32 %v46_v59, %v45_v58 }
  0xc2   :  { %v48_v61 = vrot.slane %v47_v60, 1 }
  0xc4   :  { %v49_v62 = vadd.f32 %v48_v61, %v47_v60 }
  0xc6   :  { %223 = vpush %v49_v62 }
  0xf7   :  { %s224_s2 = spop %223 }
  0xf8   :  { %s53_s6 = smul.f32 0.25, %s224_s2 }
 0x139   :  { %v190_v63 = vpop.xlane.xlu0 %189 }
 0x13a   :  { %v191_v2 = vrot.slane %v190_v63, 4 }
 0x13c   :  { %v192_v5 = vadd.f32 %v191_v2, %v190_v63 }
 0x13e   :  { %v193_v6 = vrot.slane %v192_v5, 2 }
 0x140   :  { %v194_v0 = vadd.f32 %v193_v6, %v192_v5 }
 0x142   :  { %v195_v7 = vrot.slane %v194_v0, 1 }
 0x144   :  { %v196_v8 = vadd.f32 %v195_v7, %v194_v0 }
 0x146   :  { %225 = vpush %v196_v8 }
 0x177   :  { %s226_s9 = spop %225 }
 0x178   :  { %s198_s10 = sadd.f32 %s226_s9, %s53_s6 }
 0x17a   :  { %v199_v9 = vstv %s198_s10 }
 0x17b   :  { %201 = vst.msk [vmem:[#allocation2] sm:$0x1] %vm200_vm11, %v199_v9 }
 0x17c   :  { %266 = shalt.err (!%p263_p4)
}
 0x17d   :  { %s267_s15 = scalar_lea.hbm %s389_s4, 16 }
 0x17e   :  { %p268_p5 = scmp.ne.s32.totalorder %s389_s4, %s267_s15  ;;  %p271_p6 = scmp.lt.u32.totalorder %s267_s15, %s389_s4 }
 0x180   :  { %p273_p7 = pnand %p271_p6, %p268_p5 }
 0x182   :  { %276 = shalt.err (!%p273_p7)
}
 0x183   :  { %211 = dma.vmem_to_hbm [thread:$0]  %s209_s8, 16, %s389_s4, [#allocation3]  }
 0x184   :  { %277 = dma.done.wait [#allocation3], 16  }
 0x185   :  { %278 = vsyncadd [#allocation3], 4294967280 }
 0x186   :  { %215 = vsyncpa [#allocation3], 1 }

</bundles_post_ra>
